<compile_context>
chip_gen: v5e
topology: v5e:2x2
jax: 0.10.0
libtpu: 0.0.40
codegen_flags: <defaults>
</compile_context>

<pallas_src>
import functools
import math

import jax
import jax.numpy as jnp
from jax.experimental import pallas as pl
from jax.experimental.pallas import tpu as pltpu


_ROW_TILE = 256      # rows (tokens) per grid step
_COL_TILE = 512      # output features per grid step (lane-dense stores)
_K_TILE_MAX = 2048   # contraction slice per grid step


@functools.lru_cache(maxsize=None)
def _vmem_limit_bytes():
    # ~75% of physical VMEM: ~48 MiB on v7x (64 MiB), ~96 MiB on v5e/v6e (128 MiB).
    try:
        cap = pltpu.get_tpu_info().vmem_capacity_bytes
    except Exception:
        cap = 64 * 1024 * 1024
    return min(int(cap) * 3 // 4, 100 * 1024 * 1024)


def _row_tile(rows):
    return rows if rows <= _ROW_TILE else _ROW_TILE


def _col_tile(n):
    return n if n <= _COL_TILE else _COL_TILE


def _k_tile(k):
    """Contraction tile.  Chosen as an exact divisor (or full K) so the contraction is
    never ragged (ragged K blocks would fold OOB garbage into the accumulator)."""
    if k <= _K_TILE_MAX:
        return k
    for t in (2048, 1024, 512, 256, 128):
        if k % t == 0:
            return t
    return k  # no aligned divisor: single full-K block


# ----------------------------------------------------------------------------
# K1 / K4: fused RMSNorm + matmul:  out = (g * rmsnorm(x)) @ W^T   (W is (N, K))
# ----------------------------------------------------------------------------
def _rmsnorm_matmul_kernel(x_ref, g_ref, w_ref, o_ref, xn_ref, acc_ref, *, eps, tk, nk):
    j = pl.program_id(1)
    k = pl.program_id(2)

    # Normalize + scale the row block once; reuse across every (j, k) step.
    @pl.when(jnp.logical_and(j == 0, k == 0))
    def _():
        xf = x_ref[...].astype(jnp.float32)
        var = jnp.mean(xf * xf, axis=-1, keepdims=True)
        xn = xf * jax.lax.rsqrt(var + eps)
        # Cast back to the input dtype BEFORE the weight scale / matmul (matches RMSNorm).
        xn_ref[...] = (g_ref[...] * xn.astype(x_ref.dtype)).astype(xn_ref.dtype)

    @pl.when(k == 0)
    def _():
        acc_ref[...] = jnp.zeros_like(acc_ref)

    if nk == 1:
        xk = xn_ref[...]
    else:
        xk = xn_ref[:, pl.ds(pl.multiple_of(k * tk, 128), tk)]

    acc_ref[...] += jax.lax.dot_general(
        xk, w_ref[...], (((1,), (1,)), ((), ())),
        preferred_element_type=jnp.float32)

    @pl.when(k == nk - 1)
    def _():
        o_ref[...] = acc_ref[...].astype(o_ref.dtype)


def fused_rmsnorm_linear(x2d, norm_w, w, eps):
    """x2d: (rows, K), norm_w: (K,), w: (N, K) PyTorch layout -> (rows, N)."""
    rows, K = x2d.shape
    N = w.shape[0]
    tm, tn, tk = _row_tile(rows), _col_tile(N), _k_tile(K)
    nk = pl.cdiv(K, tk)
    grid = (pl.cdiv(rows, tm), pl.cdiv(N, tn), nk)
    return pl.pallas_call(
        functools.partial(_rmsnorm_matmul_kernel, eps=eps, tk=tk, nk=nk),
        out_shape=jax.ShapeDtypeStruct((rows, N), x2d.dtype),
        grid=grid,
        in_specs=[
            pl.BlockSpec((tm, K), lambda i, j, k: (i, 0)),     # full-K row block (RMSNorm stats)
            pl.BlockSpec((1, K), lambda i, j, k: (0, 0)),      # norm weight
            pl.BlockSpec((tn, tk), lambda i, j, k: (j, k)),    # weight slice, (out, in) layout
        ],
        out_specs=pl.BlockSpec((tm, tn), lambda i, j, k: (i, j)),
        scratch_shapes=[pltpu.VMEM((tm, K), x2d.dtype),        # normalized activations
                        pltpu.VMEM((tm, tn), jnp.float32)],    # accumulator
        compiler_params=pltpu.CompilerParams(
            # j/k "arbitrary": the xn scratch is (re)built at j==0,k==0 of every row block,
            # so only the row axis may be megacore-split.
            dimension_semantics=("parallel", "arbitrary", "arbitrary"),
            vmem_limit_bytes=_vmem_limit_bytes(),
        ),
    )(x2d, norm_w.reshape(1, K), w)


# ----------------------------------------------------------------------------
# K2: per-batch causal attention, all heads packed per grid step.
# ----------------------------------------------------------------------------
def _attn_kernel(qkv_ref, o_ref, *, scale):
    # qkv_ref block: (3, 1, nH, S, Dh)
    q = qkv_ref[0, 0] * jnp.asarray(scale, qkv_ref.dtype)  # fold softmax scale into q
    k = qkv_ref[1, 0]
    v = qkv_ref[2, 0]
    s = jax.lax.dot_general(q, k, (((2,), (2,)), ((0,), (0,))),
                            preferred_element_type=jnp.float32)          # (nH, S, S)
    nh, sq, sk = s.shape
    qpos = jax.lax.broadcasted_iota(jnp.int32, (nh, sq, sk), 1)
    kpos = jax.lax.broadcasted_iota(jnp.int32, (nh, sq, sk), 2)
    s = jnp.where(kpos > qpos, -1e30, s)   # causal (triu, diag=1); finite -> NaN-proof
    m = jnp.max(s, axis=-1, keepdims=True)
    p = jnp.exp(s - m)
    l = jnp.sum(p, axis=-1, keepdims=True)
    o = jax.lax.dot_general(p.astype(v.dtype), v, (((2,), (1,)), ((0,), (0,))),
                            preferred_element_type=jnp.float32)          # (nH, S, Dh)
    o_ref[0] = (o / l).astype(o_ref.dtype)  # normalize after PV: O(S*Dh), not O(S^2)


def causal_attention(qkv_t, scale):
    """qkv_t: (3, B, num_heads, S, Dh) -> (B, num_heads, S, Dh)."""
    _, B, nH, S, Dh = qkv_t.shape
    # TODO(synk): flash-style KV tiling (online softmax + causal tile skipping) for long S;
    # the per-step (nH, S, S) f32 score block only fits VMEM for moderate S.
    return pl.pallas_call(
        functools.partial(_attn_kernel, scale=scale),
        out_shape=jax.ShapeDtypeStruct((B, nH, S, Dh), qkv_t.dtype),
        grid=(B,),
        in_specs=[pl.BlockSpec((3, 1, nH, S, Dh), lambda b: (0, b, 0, 0, 0))],
        out_specs=pl.BlockSpec((1, nH, S, Dh), lambda b: (b, 0, 0, 0)),
        compiler_params=pltpu.CompilerParams(
            dimension_semantics=("parallel",),
            vmem_limit_bytes=_vmem_limit_bytes(),
        ),
    )(qkv_t)


# ----------------------------------------------------------------------------
# K3: matmul + residual add:  out = x @ W^T + residual
# ----------------------------------------------------------------------------
def _linear_residual_kernel(x_ref, w_ref, r_ref, o_ref, acc_ref, *, nk):
    k = pl.program_id(2)

    @pl.when(k == 0)
    def _():
        acc_ref[...] = jnp.zeros_like(acc_ref)

    acc_ref[...] += jax.lax.dot_general(
        x_ref[...], w_ref[...], (((1,), (1,)), ((), ())),
        preferred_element_type=jnp.float32)

    @pl.when(k == nk - 1)
    def _():
        o_ref[...] = (acc_ref[...] + r_ref[...].astype(jnp.float32)).astype(o_ref.dtype)


def linear_residual(x2d, w, res2d):
    """x2d: (rows, K), w: (N, K), res2d: (rows, N) -> (rows, N)."""
    rows, K = x2d.shape
    N = w.shape[0]
    tm, tn, tk = _row_tile(rows), _col_tile(N), _k_tile(K)
    nk = pl.cdiv(K, tk)
    grid = (pl.cdiv(rows, tm), pl.cdiv(N, tn), nk)
    return pl.pallas_call(
        functools.partial(_linear_residual_kernel, nk=nk),
        out_shape=jax.ShapeDtypeStruct((rows, N), x2d.dtype),
        grid=grid,
        in_specs=[
            pl.BlockSpec((tm, tk), lambda i, j, k: (i, k)),
            pl.BlockSpec((tn, tk), lambda i, j, k: (j, k)),
            pl.BlockSpec((tm, tn), lambda i, j, k: (i, j)),
        ],
        out_specs=pl.BlockSpec((tm, tn), lambda i, j, k: (i, j)),
        scratch_shapes=[pltpu.VMEM((tm, tn), jnp.float32)],
        compiler_params=pltpu.CompilerParams(
            dimension_semantics=("parallel", "arbitrary", "arbitrary"),
            vmem_limit_bytes=_vmem_limit_bytes(),
        ),
    )(x2d, w, res2d)


# ----------------------------------------------------------------------------
# K5: SwiGLU + down_proj + residual:  out = (silu(gate) * up) @ Wd^T + residual
# ----------------------------------------------------------------------------
def _swiglu_down_residual_kernel(g_ref, u_ref, w_ref, r_ref, o_ref, acc_ref, *, nk):
    k = pl.program_id(2)

    @pl.when(k == 0)
    def _():
        acc_ref[...] = jnp.zeros_like(acc_ref)

    g = g_ref[...]
    gf = g.astype(jnp.float32)
    h = (gf * jax.nn.sigmoid(gf)).astype(g.dtype) * u_ref[...]   # SiLU(gate) * up, native dtype
    acc_ref[...] += jax.lax.dot_general(
        h, w_ref[...], (((1,), (1,)), ((), ())),
        preferred_element_type=jnp.float32)

    @pl.when(k == nk - 1)
    def _():
        o_ref[...] = (acc_ref[...] + r_ref[...].astype(jnp.float32)).astype(o_ref.dtype)


def swiglu_down_residual(gu, wd, res2d):
    """gu: (rows, 2*I) with gate = [:, :I], up = [:, I:]; wd: (H, I); res2d: (rows, H)."""
    rows = gu.shape[0]
    inter = gu.shape[1] // 2
    N = wd.shape[0]
    tm, tn, tk = _row_tile(rows), _col_tile(N), _k_tile(inter)
    nk = pl.cdiv(inter, tk)
    up_off = inter // tk   # block offset of the `up` half along gu's feature axis (tk | inter)
    grid = (pl.cdiv(rows, tm), pl.cdiv(N, tn), nk)
    return pl.pallas_call(
        functools.partial(_swiglu_down_residual_kernel, nk=nk),
        out_shape=jax.ShapeDtypeStruct((rows, N), gu.dtype),
        grid=grid,
        in_specs=[
            pl.BlockSpec((tm, tk), lambda i, j, k: (i, k)),            # gate half of gu
            pl.BlockSpec((tm, tk), lambda i, j, k: (i, up_off + k)),   # up half of gu (no slice copy)
            pl.BlockSpec((tn, tk), lambda i, j, k: (j, k)),
            pl.BlockSpec((tm, tn), lambda i, j, k: (i, j)),
        ],
        out_specs=pl.BlockSpec((tm, tn), lambda i, j, k: (i, j)),
        scratch_shapes=[pltpu.VMEM((tm, tn), jnp.float32)],
        compiler_params=pltpu.CompilerParams(
            dimension_semantics=("parallel", "arbitrary", "arbitrary"),
            vmem_limit_bytes=_vmem_limit_bytes(),
        ),
    )(gu, gu, wd, res2d)


# ----------------------------------------------------------------------------
# Parameter prep (one-time, at load) + full transformer block forward (inference).
# ----------------------------------------------------------------------------
def prepare_params(params):
    """Fuse QKV and gate/up weights along the output dim ONCE.  Weights keep the PyTorch
    (out_features, in_features) layout; kernels contract dim 1 directly (no transposes)."""
    return {
        "ln1": params["ln1"],
        "ln2": params["ln2"],
        "w_qkv": jnp.concatenate([params["wq"], params["wk"], params["wv"]], axis=0),  # (3H, H)
        "w_gu": jnp.concatenate([params["wg"], params["wu"]], axis=0),                 # (2I, H)
        "wo": params["wo"],                                                            # (H, H)
        "wd": params["wd"],                                                            # (H, I)
    }


def bitnet_v3_transformer_block(x, prepared, *, num_heads, eps=1e-6):
    """x: (B, S, H); `prepared` from prepare_params().  Dropouts = identity (eval)."""
    B, S, H = x.shape
    rows = B * S
    Dh = H // num_heads
    scale = 1.0 / math.sqrt(Dh)
    x2d = x.reshape(rows, H)

    # K1: input RMSNorm fused into the QKV projection.
    qkv = fused_rmsnorm_linear(x2d, prepared["ln1"], prepared["w_qkv"], eps)     # (rows, 3H)

    # Single split + head-transpose pass; q/k/v stay packed in one array for attention.
    qkv_t = qkv.reshape(B, S, 3, num_heads, Dh).transpose(2, 0, 3, 1, 4)         # (3, B, nH, S, Dh)
    # TODO(synk): consume qkv / write the attention output directly in (B, S, H) layout to
    # drop the split/merge transposes (needs Dh-aligned in-kernel head packing).
    attn = causal_attention(qkv_t, scale)                                        # (B, nH, S, Dh)
    attn2d = attn.transpose(0, 2, 1, 3).reshape(rows, H)

    # K3: o_proj + residual add.
    h1 = linear_residual(attn2d, prepared["wo"], x2d)                            # (rows, H)

    # K4: post-attention RMSNorm fused into the gate/up projection.
    gu = fused_rmsnorm_linear(h1, prepared["ln2"], prepared["w_gu"], eps)        # (rows, 2I)

    # K5: SiLU(gate)*up fused into down_proj + residual add.
    out2d = swiglu_down_residual(gu, prepared["wd"], h1)                         # (rows, H)
    return out2d.reshape(B, S, H)


# ----------------------------------------------------------------------------
# Pure-JAX reference matching the PyTorch forward (eval mode).
# ----------------------------------------------------------------------------
def bitnet_v3_transformer_block_ref(x, params, *, num_heads, eps=1e-6):
    B, S, H = x.shape
    Dh = H // num_heads

    def rmsnorm(h, w):
        dt = h.dtype
        hf = h.astype(jnp.float32)
        var = jnp.mean(hf * hf, axis=-1, keepdims=True)
        hf = hf * jax.lax.rsqrt(var + eps)
        return w * hf.astype(dt)

    hs = rmsnorm(x, params["ln1"])
    q = (hs @ params["wq"].T).reshape(B, S, num_heads, Dh).transpose(0, 2, 1, 3)
    k = (hs @ params["wk"].T).reshape(B, S, num_heads, Dh).transpose(0, 2, 1, 3)
    v = (hs @ params["wv"].T).reshape(B, S, num_heads, Dh).transpose(0, 2, 1, 3)
    scores = jnp.einsum("bhqd,bhkd->bhqk", q, k) / math.sqrt(Dh)
    causal = jnp.triu(jnp.ones((S, S), dtype=bool), k=1)
    scores = jnp.where(causal[None, None], -jnp.inf, scores)
    w_attn = jax.nn.softmax(scores, axis=-1)
    ao = jnp.einsum("bhqk,bhkd->bhqd", w_attn, v)
    ao = ao.transpose(0, 2, 1, 3).reshape(B, S, H) @ params["wo"].T
    h1 = x + ao
    hs2 = rmsnorm(h1, params["ln2"])
    gate = hs2 @ params["wg"].T
    up = hs2 @ params["wu"].T
    down = (jax.nn.silu(gate) * up) @ params["wd"].T
    return h1 + down


if __name__ == "__main__":
    key = jax.random.PRNGKey(0)
    B, S, H, NUM_HEADS, INTER = 2, 8, 32, 2, 64
    EPS = 1e-6
    ks = jax.random.split(key, 8)

    x = jax.random.normal(ks[0], (B, S, H), dtype=jnp.float32)
    w_scale = 0.05
    params = {
        "ln1": jnp.ones((H,), jnp.float32),     # RMSNorm init = ones
        "ln2": jnp.ones((H,), jnp.float32),
        "wq": jax.random.normal(ks[1], (H, H), jnp.float32) * w_scale,
        "wk": jax.random.normal(ks[2], (H, H), jnp.float32) * w_scale,
        "wv": jax.random.normal(ks[3], (H, H), jnp.float32) * w_scale,
        "wo": jax.random.normal(ks[4], (H, H), jnp.float32) * w_scale,
        "wg": jax.random.normal(ks[5], (INTER, H), jnp.float32) * w_scale,
        "wu": jax.random.normal(ks[6], (INTER, H), jnp.float32) * w_scale,
        "wd": jax.random.normal(ks[7], (H, INTER), jnp.float32) * w_scale,
    }

    prepared = prepare_params(params)
    out = bitnet_v3_transformer_block(x, prepared, num_heads=NUM_HEADS, eps=EPS)
    out = jax.block_until_ready(out)

    ref = bitnet_v3_transformer_block_ref(x, params, num_heads=NUM_HEADS, eps=EPS)
    assert out.shape == x.shape
    assert out.dtype == x.dtype
    max_err = float(jnp.max(jnp.abs(out - ref)))
    assert jnp.allclose(out, ref, atol=1e-4, rtol=1e-4), f"mismatch, max err {max_err}"

    print("KERNEL_OK")
</pallas_src>

<mosaic_0001>
module attributes {stable_mosaic.version = 11 : i64} {
  func.func @_rmsnorm_matmul_kernel(%arg0: i32, %arg1: i32, %arg2: i32, %arg3: memref<16x32xf32, #tpu.memory_space<vmem>>, %arg4: memref<1x32xf32, #tpu.memory_space<vmem>>, %arg5: memref<96x32xf32, #tpu.memory_space<vmem>>, %arg6: memref<16x96xf32, #tpu.memory_space<vmem>>, %arg7: memref<16x32xf32, #tpu.memory_space<vmem>>, %arg8: memref<16x96xf32, #tpu.memory_space<vmem>>) attributes {dimension_semantics = [#tpu.dimension_semantics<parallel>, #tpu.dimension_semantics<arbitrary>, #tpu.dimension_semantics<arbitrary>], iteration_bounds = array<i64: 1, 1, 1>, scalar_prefetch = 0 : i64, scratch_operands = 2 : i64, tpu.core_type = #tpu.core_type<tc>, window_params = [{transform_indices = @transform_0, window_bounds = array<i64: 16, 32>}, {pipeline_mode = #tpu.pipeline_mode<synchronous>, transform_indices = @transform_1, window_bounds = array<i64: 1, 32>}, {transform_indices = @transform_2, window_bounds = array<i64: 96, 32>}, {transform_indices = @transform_3, window_bounds = array<i64: 16, 96>}]} {
    %c0_i32 = arith.constant 0 : i32
    %0 = arith.cmpi eq, %arg1, %c0_i32 : i32
    %c0_i32_0 = arith.constant 0 : i32
    %1 = arith.cmpi eq, %arg2, %c0_i32_0 : i32
    %2 = arith.andi %0, %1 : i1
    %3 = arith.extui %2 : i1 to i32
    %c0_i32_1 = arith.constant 0 : i32
    %4 = arith.cmpi ne, %3, %c0_i32_1 : i32
    scf.if %4 {
      %c0_13 = arith.constant 0 : index
      %c0_14 = arith.constant 0 : index
      %17 = vector.load %arg3[%c0_13, %c0_14] : memref<16x32xf32, #tpu.memory_space<vmem>>, vector<16x32xf32>
      %18 = arith.mulf %17, %17 : vector<16x32xf32>
      %cst_15 = arith.constant dense<0.000000e+00> : vector<16xf32>
      %19 = vector.multi_reduction <add>, %18, %cst_15 [1] : vector<16x32xf32> to vector<16xf32>
      %20 = vector.shape_cast %19 : vector<16xf32> to vector<16x1xf32>
      %cst_16 = arith.constant 3.200000e+01 : f32
      %21 = vector.broadcast %cst_16 : f32 to vector<16x1xf32>
      %22 = arith.divf %20, %21 : vector<16x1xf32>
      %cst_17 = arith.constant 9.99999997E-7 : f32
      %23 = vector.broadcast %cst_17 : f32 to vector<16x1xf32>
      %24 = arith.addf %22, %23 : vector<16x1xf32>
      %25 = math.rsqrt %24 : vector<16x1xf32>
      %26 = vector.broadcast %25 : vector<16x1xf32> to vector<16x32xf32>
      %27 = arith.mulf %17, %26 : vector<16x32xf32>
      %c0_18 = arith.constant 0 : index
      %c0_19 = arith.constant 0 : index
      %28 = vector.load %arg4[%c0_18, %c0_19] : memref<1x32xf32, #tpu.memory_space<vmem>>, vector<1x32xf32>
      %29 = vector.broadcast %28 : vector<1x32xf32> to vector<16x32xf32>
      %30 = arith.mulf %29, %27 : vector<16x32xf32>
      %c0_20 = arith.constant 0 : index
      %c0_21 = arith.constant 0 : index
      %31 = vector.load %arg7[%c0_20, %c0_21] : memref<16x32xf32, #tpu.memory_space<vmem>>, vector<16x32xf32>
      tpu.vector_store %arg7[%c0_20, %c0_21], %30 {strides = array<i32>} : memref<16x32xf32, #tpu.memory_space<vmem>>, vector<16x32xf32>,
    } else {
    }
    %c0_i32_2 = arith.constant 0 : i32
    %5 = arith.cmpi eq, %arg2, %c0_i32_2 : i32
    %6 = arith.extui %5 : i1 to i32
    %c0_i32_3 = arith.constant 0 : i32
    %7 = arith.cmpi ne, %6, %c0_i32_3 : i32
    scf.if %7 {
      %cst_13 = arith.constant 0.000000e+00 : f32
      %17 = vector.broadcast %cst_13 : f32 to vector<16x96xf32>
      %c0_14 = arith.constant 0 : index
      %c0_15 = arith.constant 0 : index
      %18 = vector.load %arg8[%c0_14, %c0_15] : memref<16x96xf32, #tpu.memory_space<vmem>>, vector<16x96xf32>
      tpu.vector_store %arg8[%c0_14, %c0_15], %17 {strides = array<i32>} : memref<16x96xf32, #tpu.memory_space<vmem>>, vector<16x96xf32>,
    } else {
    }
    %c0 = arith.constant 0 : index
    %c0_4 = arith.constant 0 : index
    %8 = vector.load %arg7[%c0, %c0_4] : memref<16x32xf32, #tpu.memory_space<vmem>>, vector<16x32xf32>
    %c0_5 = arith.constant 0 : index
    %c0_6 = arith.constant 0 : index
    %9 = vector.load %arg8[%c0_5, %c0_6] : memref<16x96xf32, #tpu.memory_space<vmem>>, vector<16x96xf32>
    %c0_7 = arith.constant 0 : index
    %c0_8 = arith.constant 0 : index
    %10 = vector.load %arg5[%c0_7, %c0_8] : memref<96x32xf32, #tpu.memory_space<vmem>>, vector<96x32xf32>
    %cst = arith.constant dense<0.000000e+00> : vector<16x96xf32>
    %11 = tpu.matmul %8, %10, %cst {dimension_numbers = #tpu.dot_dimension_numbers<[1], [1], [0], [0], [0, 0, 1, 0], [], []>} : vector<16x32xf32>, vector<96x32xf32>, vector<16x96xf32> -> vector<16x96xf32>
    %12 = arith.addf %9, %11 : vector<16x96xf32>
    %c0_9 = arith.constant 0 : index
    %c0_10 = arith.constant 0 : index
    %13 = vector.load %arg8[%c0_9, %c0_10] : memref<16x96xf32, #tpu.memory_space<vmem>>, vector<16x96xf32>
    tpu.vector_store %arg8[%c0_9, %c0_10], %12 {strides = array<i32>} : memref<16x96xf32, #tpu.memory_space<vmem>>, vector<16x96xf32>,
    %c0_i32_11 = arith.constant 0 : i32
    %14 = arith.cmpi eq, %arg2, %c0_i32_11 : i32
    %15 = arith.extui %14 : i1 to i32
    %c0_i32_12 = arith.constant 0 : i32
    %16 = arith.cmpi ne, %15, %c0_i32_12 : i32
    scf.if %16 {
      %c0_13 = arith.constant 0 : index
      %c0_14 = arith.constant 0 : index
      %17 = vector.load %arg8[%c0_13, %c0_14] : memref<16x96xf32, #tpu.memory_space<vmem>>, vector<16x96xf32>
      %c0_15 = arith.constant 0 : index
      %c0_16 = arith.constant 0 : index
      %18 = vector.load %arg6[%c0_15, %c0_16] : memref<16x96xf32, #tpu.memory_space<vmem>>, vector<16x96xf32>
      tpu.vector_store %arg6[%c0_15, %c0_16], %17 {strides = array<i32>} : memref<16x96xf32, #tpu.memory_space<vmem>>, vector<16x96xf32>,
    } else {
    }
    return
  }
  func.func @transform_0(%arg0: i32, %arg1: i32, %arg2: i32) -> (i32, i32) {
    %c0_i32 = arith.constant 0 : i32
    %c0_i32_0 = arith.constant 0 : i32
    return %arg0, %c0_i32 : i32, i32
  }
  func.func @transform_1(%arg0: i32, %arg1: i32, %arg2: i32) -> (i32, i32) {
    %c0_i32 = arith.constant 0 : i32
    %c0_i32_0 = arith.constant 0 : i32
    %c0_i32_1 = arith.constant 0 : i32
    return %c0_i32, %c0_i32_0 : i32, i32
  }
  func.func @transform_2(%arg0: i32, %arg1: i32, %arg2: i32) -> (i32, i32) {
    %c0_i32 = arith.constant 0 : i32
    return %arg1, %arg2 : i32, i32
  }
  func.func @transform_3(%arg0: i32, %arg1: i32, %arg2: i32) -> (i32, i32) {
    %c0_i32 = arith.constant 0 : i32
    return %arg0, %arg1 : i32, i32
  }
}

</mosaic_0001>

<bundles_post_ra>
// kernel: tpu_custom_call.1
= control target key start
LH: loop header
LB: loop body
LE: loop exit
PB: predicated region body
PF: predicated region fallthrough
CT: control target
= control target key end

     0   :  { %vm25_vm0 = vcmask 261120   ;;  %s374_s0 = inlined_call_operand.vmem [shape: f32[16,32], index: 0, kind: input, shape index: {}]   ;;  %s375_s1 = inlined_call_operand.vmem [shape: f32[1,32], index: 1, kind: input, shape index: {}]   ;;  %s376_s2 = inlined_call_operand.vmem [shape: f32[96,32], index: 2, kind: input, shape index: {}]   ;;  %s377_s3 = inlined_call_operand.hbm [shape: f32[16,96], index: 3, kind: output, shape index: {}]  }
   0x1   :  { %v283_v0 = vld [vmem:[%s374_s0] sm:$0xff]  ;;  %v94_v1 = vld [vmem:[%s376_s2 + $0x58] sm:$0xff]  ;;  %v293_v3 = vld [vmem:[%s374_s0 + $0x8] sm:$0xff] }
   0x2   :  { %v23_v2 = vmul.f32 %v283_v0, %v283_v0  ;;  %191 = vmatpush.xpose.msk.msra.mxu0 %vm25_vm0, %v94_v1  ;;  %205 = vmatpush.xpose.msk.msra.mxu1 %vm25_vm0, %v94_v1  ;;  %v93_v4 = vld [vmem:[%s376_s2 + $0x50] sm:$0xff] }
   0x3   :  { %8 = vsyncpa [#allocation5], 0  ;;  %v24_v6 = vmul.f32 %v293_v3, %v293_v3  ;;  %v92_v7 = vld [vmem:[%s376_s2 + $0x48] sm:$0xff]  ;;  %v91_v9 = vld [vmem:[%s376_s2 + $0x40] sm:$0xff]  ;;  %v255_v11 = vmov 32.0   ;;  %vm76_vm2 = vcmask 785408  }
   0x4   :  { %v26_v5 = vsel %vm25_vm0, %v23_v2, 0.0  ;;  %v90_v10 = vld [vmem:[%s376_s2 + $0x38] sm:$0xff]  ;;  %223 = vrcp.f32 %v255_v11  ;;  %v89_v12 = vld [vmem:[%s376_s2 + $0x30] sm:$0xff]  ;;  %v88_v14 = vld [vmem:[%s376_s2 + $0x28] sm:$0xff]  ;;  %v256_v33 = vmov 0.0   ;;  %s179_s16 = sshll.u32 %s377_s3, 4  ;;  %s180_s16 = int_to_ptr.hbm [resolvable:$true] %s179_s16 }
   0x5   :  { %27 = vadd.xlane.f32.xlu0 %v26_v5  ;;  %v29_v8 = vsel %vm25_vm0, %v24_v6, 0.0  ;;  %v87_v16 = vld [vmem:[%s376_s2 + $0x20] sm:$0xff]  ;;  %v86_v18 = vld [vmem:[%s376_s2 + $0x18] sm:$0xff]  ;;  %v85_v20 = vld [vmem:[%s376_s2 + $0x10] sm:$0xff]  ;;  %77 = vst.msk [vmem:[#allocation3] sm:$0xff] %vm76_vm2, %v256_v33  ;;  %s258_s17 = smov 128  }
   0x6   :  { %192 = vmatpush.xpose.msk.msra.mxu0 %vm25_vm0, %v93_v4  ;;  %206 = vmatpush.xpose.msk.msra.mxu1 %vm25_vm0, %v93_v4  ;;  %v84_v22 = vld [vmem:[%s376_s2 + $0x8] sm:$0xff]  ;;  %v83_v24 = vld [vmem:[%s376_s2] sm:$0xff]  ;;  %78 = vst.msk [vmem:[#allocation3 + $0x8] sm:$0xff] %vm76_vm2, %v256_v33  ;;  %s259_s18 = smov 8  }
   0x7   :  { %v222_v40 = vld [vmem:[%s375_s1] ss:$0 sm:$0xff]  ;;  %s257_s1 = smov [#allocation4]  }
   0x8   :  { %s177_s13 = sshll.u32 %s257_s1, 4  ;;  %s178_s13 = int_to_ptr.vmem [resolvable:$true] %s177_s13 }
   0xa   :  { %193 = vmatpush.xpose.msk.msra.mxu0 %vm25_vm0, %v92_v7  ;;  %207 = vmatpush.xpose.msk.msra.mxu1 %vm25_vm0, %v92_v7  ;;  %v224_v13 = vpop.eup %223 }
   0xb   :  { %v33_v15 = vmul.f32 32.0, %v224_v13  ;;  %vm37_vm1 = vweird.f32 %v224_v13 }
   0xc   :  { %v81_v53 = vld [vmem:[#allocation3] sm:$0xff] }
   0xd   :  { %30 = vadd.xlane.f32.xlu0 %v29_v8  ;;  %v34_v17 = vsub.f32 1.0, %v33_v15  ;;  %v82_v56 = vld [vmem:[#allocation3 + $0x8] sm:$0xff] }
   0xe   :  { %194 = vmatpush.xpose.msk.msra.mxu0 %vm25_vm0, %v91_v9  ;;  %208 = vmatpush.xpose.msk.msra.mxu1 %vm25_vm0, %v91_v9 }
   0xf   :  { %v35_v19 = vmul.f32 %v224_v13, %v34_v17 }
  0x11   :  { %v36_v21 = vadd.f32 %v224_v13, %v35_v19 }
  0x12   :  { %195 = vmatpush.xpose.msk.msra.mxu0 %vm25_vm0, %v90_v10  ;;  %209 = vmatpush.xpose.msk.msra.mxu1 %vm25_vm0, %v90_v10 }
  0x13   :  { %v38_v23 = vsel %vm37_vm1, %v224_v13, %v36_v21 }
  0x16   :  { %196 = vmatpush.xpose.msk.msra.mxu0 %vm25_vm0, %v89_v12  ;;  %210 = vmatpush.xpose.msk.msra.mxu1 %vm25_vm0, %v89_v12 }
  0x1a   :  { %197 = vmatpush.xpose.msk.msra.mxu0 %vm25_vm0, %v88_v14  ;;  %211 = vmatpush.xpose.msk.msra.mxu1 %vm25_vm0, %v88_v14 }
  0x1e   :  { %198 = vmatpush.xpose.msk.msra.mxu0 %vm25_vm0, %v87_v16  ;;  %212 = vmatpush.xpose.msk.msra.mxu1 %vm25_vm0, %v87_v16 }
  0x22   :  { %199 = vmatpush.xpose.msk.msra.mxu0 %vm25_vm0, %v86_v18  ;;  %213 = vmatpush.xpose.msk.msra.mxu1 %vm25_vm0, %v86_v18 }
  0x26   :  { %200 = vmatpush.xpose.msk.msra.mxu0 %vm25_vm0, %v85_v20  ;;  %214 = vmatpush.xpose.msk.msra.mxu1 %vm25_vm0, %v85_v20 }
  0x2a   :  { %201 = vmatpush.xpose.msk.msra.mxu0 %vm25_vm0, %v84_v22  ;;  %215 = vmatpush.xpose.msk.msra.mxu1 %vm25_vm0, %v84_v22 }
  0x2e   :  { %202 = vmatpush.xpose.msk.msra.mxu0 %vm25_vm0, %v83_v24  ;;  %216 = vmatpush.xpose.msk.msra.mxu1 %vm25_vm0, %v83_v24 }
  0x78   :  { %v28_v25 = vpop.xlane.xlu0 %27 }
  0x79   :  { %v39_v26 = vmul.f32 %v38_v23, %v28_v25 }
  0x7b   :  { %v41_v27 = vadd.f32 1e-06, %v39_v26 }
  0x7d   :  { %225 = vrsqrt.f32 %v41_v27  ;;  %vm49_vm4 = vweird.f32 %v41_v27 }
  0x80   :  { %v31_v28 = vpop.xlane.xlu0 %30 }
  0x81   :  { %v40_v29 = vmul.f32 %v38_v23, %v31_v28 }
  0x83   :  { %v226_v30 = vpop.eup %225  ;;  %v42_v31 = vadd.f32 1e-06, %v40_v29 }
  0x84   :  { %v44_v32 = vmul.f32 %v226_v30, %v41_v27  ;;  %vm50_vm3 = vweird.f32 %v226_v30 }
  0x85   :  { %227 = vrsqrt.f32 %v42_v31  ;;  %vm51_vm5 = vmor %vm49_vm4, %vm50_vm3  ;;  %vm59_vm7 = vweird.f32 %v42_v31 }
  0x86   :  { %v45_v34 = vmul.f32 %v226_v30, %v44_v32 }
  0x88   :  { %v46_v35 = vmul.f32 0.5, %v45_v34 }
  0x8a   :  { %v47_v36 = vsub.f32 1.5, %v46_v35 }
  0x8b   :  { %v228_v37 = vpop.eup %227 }
  0x8c   :  { %v48_v38 = vmul.f32 %v226_v30, %v47_v36  ;;  %v54_v39 = vmul.f32 %v228_v37, %v42_v31  ;;  %vm60_vm6 = vweird.f32 %v228_v37 }
  0x8d   :  { %vm61_vm8 = vmor %vm59_vm7, %vm60_vm6 }
  0x8e   :  { %v52_v41 = vsel %vm51_vm5, %v226_v30, %v48_v38  ;;  %v55_v42 = vmul.f32 %v228_v37, %v54_v39 }
  0x8f   :  { %v63_v43 = vmul.f32 %v52_v41, %v283_v0 }
  0x90   :  { %v56_v44 = vmul.f32 0.5, %v55_v42 }
  0x91   :  { %v69_v45 = vmul.f32 %v222_v40, %v63_v43 }
  0x92   :  { %v57_v46 = vsub.f32 1.5, %v56_v44 }
  0x93   :  { %71 = vst.msk [vmem:[#allocation2] sm:$0xff] %vm25_vm0, %v69_v45 }
  0x94   :  { %v58_v47 = vmul.f32 %v228_v37, %v57_v46 }
  0x96   :  { %v62_v48 = vsel %vm61_vm8, %v228_v37, %v58_v47 }
  0x97   :  { %v64_v49 = vmul.f32 %v62_v48, %v293_v3 }
  0x99   :  { %v70_v50 = vmul.f32 %v222_v40, %v64_v49 }
  0x9a   :  { %v79_v51 = vld [vmem:[#allocation2] sm:$0xff] }
  0x9b   :  { %72 = vst.msk [vmem:[#allocation2 + $0x8] sm:$0xff] %vm25_vm0, %v70_v50  ;;  %203 = vmatmul.msk.f32.vlgmr.msra.gmra.mxu0 %vm25_vm0, %v79_v51 }
  0xa2   :  { %v80_v52 = vld [vmem:[#allocation2 + $0x8] sm:$0xff] }
  0xa3   :  { %204 = vmatmul.msk.f32.vlgmr.msra.gmra.mxu1 %vm25_vm0, %v80_v52 }
 0x118   :  { %v155_v54 = vpop.f32.mrf.mxu0 }
 0x119   :  { %v161_v55 = vadd.f32 %v155_v54, %v81_v53 }
 0x11b   :  { %164 = vst.msk [vmem:[#allocation3] sm:$0xff] %vm76_vm2, %v161_v55 }
 0x120   :  { %v158_v57 = vpop.f32.mrf.mxu1 }
 0x121   :  { %v162_v58 = vadd.f32 %v158_v57, %v82_v56 }
 0x122   :  { %v169_v59 = vld [vmem:[#allocation3] sm:$0xff] }
 0x123   :  { %165 = vst.msk [vmem:[#allocation3 + $0x8] sm:$0xff] %vm76_vm2, %v162_v58 }
 0x124   :  { %171 = vst.msk [vmem:[#allocation4] sm:$0xff] %vm76_vm2, %v169_v59 }
 0x12a   :  { %v170_v60 = vld [vmem:[#allocation3 + $0x8] sm:$0xff] }
 0x12b   :  { %172 = vst.msk [vmem:[#allocation4 + $0x8] sm:$0xff] %vm76_vm2, %v170_v60 }
 0x12c   :  { %185 = dma.vmem_to_hbm [thread:$0]  %s178_s13, 256, %s180_s16, [#allocation5], %s258_s17, %s258_s17, %s259_s18  }
 0x12d   :  { %253 = dma.done.wait [#allocation5], 256  }
 0x12e   :  { %254 = vsyncadd [#allocation5], 4294967040 }
 0x12f   :  { %190 = vsyncpa [#allocation5], 1 }

</bundles_post_ra>
